<compile_context>
chip_gen: v7x
topology: tpu7x:2x2x1
jax: 0.10.0
libtpu: 0.0.40
codegen_flags: <defaults>
</compile_context>

<pallas_src>
import jax
import jax.numpy as jnp
from jax.experimental import pallas as pl
from jax.experimental.pallas import tpu as pltpu


def _stats_kernel(x_ref, sum_ref, sq_ref):
    # x_ref: (TM, E_fold) tile; sum/sq: (1, E_fold) resident f32 accumulators.
    @pl.when(pl.program_id(0) == 0)
    def _init():
        sum_ref[...] = jnp.zeros_like(sum_ref)
        sq_ref[...] = jnp.zeros_like(sq_ref)

    x = x_ref[...].astype(jnp.float32)
    sum_ref[...] += jnp.sum(x, axis=0, keepdims=True)
    sq_ref[...] += jnp.sum(x * x, axis=0, keepdims=True)


def _apply_kernel(x_ref, p_ref, o_ref):
    # x_ref: (TM, E_fold) tile (native dtype); p_ref: (4, E_fold) f32
    #   p[0]=scale, p[1]=shift, p[2]=alpha, p[3]=1-alpha
    xf = x_ref[...].astype(jnp.float32)
    p = p_ref[...]
    scale = p[0:1, :]
    shift = p[1:2, :]
    alpha = p[2:3, :]
    oma = p[3:4, :]
    z = xf * scale + shift
    g = jax.nn.sigmoid(z)                      # EUP slot
    o_ref[...] = (xf * (alpha + oma * g)).astype(o_ref.dtype)


def dice_forward(x, alpha, beta, gamma, bias, eps=1e-8):
    """Dice (dim=3) forward.

    x:     (B, T, E)
    alpha: (E,)   -- PyTorch stores (E, 1); per-channel broadcast is identical
    beta:  (E,)
    gamma: (E,)   -- BatchNorm1d weight
    bias:  (E,)   -- BatchNorm1d bias
    """
    B, T, E = x.shape
    N = B * T
    x2 = x.reshape(N, E)

    # --- lane-density folding: pack k rows into the lane dim when E < 128 ---
    if E < 128 and 128 % E == 0:
        k = 128 // E
    else:
        k = 1
    E_fold = k * E

    # --- row tiling (in folded rows) ---
    rows = -(-N // k)
    TM = min(1024, ((rows + 7) // 8) * 8)          # sublane-aligned tile
    rows_pad = ((rows + TM - 1) // TM) * TM
    n_tiles = rows_pad // TM
    N_pad = rows_pad * k

    # zero padding: contributes 0 to sum / sumsq; sliced off after apply pass
    x_pad = jnp.pad(x2, ((0, N_pad - N), (0, 0)))
    x_fold = x_pad.reshape(rows_pad, E_fold)

    vmem_limit = 32 * 1024 * 1024

    # -------------------- phase 1: streaming channel stats -------------------
    sum_f, sq_f = pl.pallas_call(
        _stats_kernel,
        out_shape=(
            jax.ShapeDtypeStruct((1, E_fold), jnp.float32),
            jax.ShapeDtypeStruct((1, E_fold), jnp.float32),
        ),
        grid_spec=pl.GridSpec(
            grid=(n_tiles,),
            in_specs=[pl.BlockSpec((TM, E_fold), lambda i: (i, 0))],
            out_specs=(
                pl.BlockSpec((1, E_fold), lambda i: (0, 0)),
                pl.BlockSpec((1, E_fold), lambda i: (0, 0)),
            ),
        ),
        compiler_params=pltpu.CompilerParams(
            dimension_semantics=("arbitrary",),
            vmem_limit_bytes=vmem_limit,
        ),
    )(x_fold)

    # ----------------- tiny finalize: fold BN + beta + alpha -----------------
    s = sum_f.reshape(k, E).sum(axis=0)
    sq = sq_f.reshape(k, E).sum(axis=0)
    mean = s / N
    var = jnp.maximum(sq / N - mean * mean, 0.0)   # biased (training-mode) var
    rstd = jax.lax.rsqrt(var + eps)
    g_r = gamma.astype(jnp.float32) * rstd
    scale = beta.astype(jnp.float32) * g_r
    shift = beta.astype(jnp.float32) * (bias.astype(jnp.float32) - mean * g_r)
    a32 = alpha.astype(jnp.float32)
    params = jnp.stack([
        jnp.tile(scale, k),
        jnp.tile(shift, k),
        jnp.tile(a32, k),
        jnp.tile(1.0 - a32, k),
    ], axis=0)                                      # (4, E_fold) f32

    # --------------------------- phase 2: apply -------------------------------
    out_fold = pl.pallas_call(
        _apply_kernel,
        out_shape=jax.ShapeDtypeStruct((rows_pad, E_fold), x.dtype),
        grid_spec=pl.GridSpec(
            grid=(n_tiles,),
            in_specs=[
                pl.BlockSpec((TM, E_fold), lambda i: (i, 0)),
                pl.BlockSpec((4, E_fold), lambda i: (0, 0)),
            ],
            out_specs=pl.BlockSpec((TM, E_fold), lambda i: (i, 0)),
        ),
        compiler_params=pltpu.CompilerParams(
            dimension_semantics=("parallel",),       # megacore on v7x
            vmem_limit_bytes=vmem_limit,
        ),
    )(x_fold, params)

    out = out_fold.reshape(rows_pad * k, E)[:N]
    return out.reshape(B, T, E)


def dice_reference(x, alpha, beta, gamma, bias, eps=1e-8):
    """Pure-JAX reference mirroring the PyTorch forward (dim=3)."""
    xt = jnp.transpose(x, (0, 2, 1)).astype(jnp.float32)      # (B, E, T)
    mean = jnp.mean(xt, axis=(0, 2), keepdims=True)
    var = jnp.mean((xt - mean) ** 2, axis=(0, 2), keepdims=True)
    bn = (xt - mean) / jnp.sqrt(var + eps)
    bn = bn * gamma[None, :, None] + bias[None, :, None]
    x_n = jax.nn.sigmoid(beta[None, :, None] * bn)
    out = alpha[None, :, None] * (1.0 - x_n) * xt + x_n * xt
    return jnp.transpose(out, (0, 2, 1)).astype(x.dtype)


if __name__ == "__main__":
    B, T, E = 2, 8, 32
    eps = 1e-8

    key = jax.random.PRNGKey(0)
    kx, ka, kb = jax.random.split(key, 3)

    x = jax.random.normal(kx, (B, T, E), dtype=jnp.float32)

    # Module __init__ sets alpha/beta to zeros (shape (E,1)); BatchNorm1d has
    # gamma=1, bias=0. We use small deterministic nonzero alpha/beta so the
    # gating path is actually exercised (synthetic params, not a checkpoint).
    alpha = 0.25 * jax.random.normal(ka, (E,), dtype=jnp.float32)
    beta = 0.5 + 0.1 * jax.random.normal(kb, (E,), dtype=jnp.float32)
    gamma = jnp.ones((E,), dtype=jnp.float32)
    bias = jnp.zeros((E,), dtype=jnp.float32)

    out = dice_forward(x, alpha, beta, gamma, bias, eps=eps)
    out = jax.block_until_ready(out)

    ref = dice_reference(x, alpha, beta, gamma, bias, eps=eps)
    assert out.shape == (B, T, E)
    assert jnp.allclose(out, ref, atol=1e-5, rtol=1e-5), (
        f"max abs err {jnp.max(jnp.abs(out - ref))}")

    print("KERNEL_OK")
</pallas_src>

<mosaic_0001>
module attributes {stable_mosaic.version = 11 : i64} {
  func.func @_stats_kernel(%arg0: i32, %arg1: memref<8x128xf32, #tpu.memory_space<vmem>>, %arg2: memref<1x128xf32, #tpu.memory_space<vmem>>, %arg3: memref<1x128xf32, #tpu.memory_space<vmem>>) attributes {dimension_semantics = [#tpu.dimension_semantics<arbitrary>], iteration_bounds = array<i64: 1>, scalar_prefetch = 0 : i64, scratch_operands = 0 : i64, tpu.core_type = #tpu.core_type<tc>, window_params = [{transform_indices = @transform_0, window_bounds = array<i64: 8, 128>}, {pipeline_mode = #tpu.pipeline_mode<synchronous>, transform_indices = @transform_1, window_bounds = array<i64: 1, 128>}, {pipeline_mode = #tpu.pipeline_mode<synchronous>, transform_indices = @transform_2, window_bounds = array<i64: 1, 128>}]} {
    %c0_i32 = arith.constant 0 : i32
    %0 = arith.cmpi eq, %arg0, %c0_i32 : i32
    %1 = arith.extui %0 : i1 to i32
    %c0_i32_0 = arith.constant 0 : i32
    %2 = arith.cmpi ne, %1, %c0_i32_0 : i32
    scf.if %2 {
      %cst_11 = arith.constant 0.000000e+00 : f32
      %15 = vector.broadcast %cst_11 : f32 to vector<1x128xf32>
      %c0_12 = arith.constant 0 : index
      %c0_13 = arith.constant 0 : index
      %16 = vector.load %arg2[%c0_12, %c0_13] : memref<1x128xf32, #tpu.memory_space<vmem>>, vector<1x128xf32>
      tpu.vector_store %arg2[%c0_12, %c0_13], %15 {strides = array<i32>} : memref<1x128xf32, #tpu.memory_space<vmem>>, vector<1x128xf32>,
      %cst_14 = arith.constant 0.000000e+00 : f32
      %17 = vector.broadcast %cst_14 : f32 to vector<1x128xf32>
      %c0_15 = arith.constant 0 : index
      %c0_16 = arith.constant 0 : index
      %18 = vector.load %arg3[%c0_15, %c0_16] : memref<1x128xf32, #tpu.memory_space<vmem>>, vector<1x128xf32>
      tpu.vector_store %arg3[%c0_15, %c0_16], %17 {strides = array<i32>} : memref<1x128xf32, #tpu.memory_space<vmem>>, vector<1x128xf32>,
    } else {
    }
    %c0 = arith.constant 0 : index
    %c0_1 = arith.constant 0 : index
    %3 = vector.load %arg1[%c0, %c0_1] : memref<8x128xf32, #tpu.memory_space<vmem>>, vector<8x128xf32>
    %c0_2 = arith.constant 0 : index
    %c0_3 = arith.constant 0 : index
    %4 = vector.load %arg2[%c0_2, %c0_3] : memref<1x128xf32, #tpu.memory_space<vmem>>, vector<1x128xf32>
    %cst = arith.constant dense<0.000000e+00> : vector<128xf32>
    %5 = vector.multi_reduction <add>, %3, %cst [0] : vector<8x128xf32> to vector<128xf32>
    %6 = vector.shape_cast %5 : vector<128xf32> to vector<1x128xf32>
    %7 = arith.addf %4, %6 : vector<1x128xf32>
    %c0_4 = arith.constant 0 : index
    %c0_5 = arith.constant 0 : index
    %8 = vector.load %arg2[%c0_4, %c0_5] : memref<1x128xf32, #tpu.memory_space<vmem>>, vector<1x128xf32>
    tpu.vector_store %arg2[%c0_4, %c0_5], %7 {strides = array<i32>} : memref<1x128xf32, #tpu.memory_space<vmem>>, vector<1x128xf32>,
    %c0_6 = arith.constant 0 : index
    %c0_7 = arith.constant 0 : index
    %9 = vector.load %arg3[%c0_6, %c0_7] : memref<1x128xf32, #tpu.memory_space<vmem>>, vector<1x128xf32>
    %10 = arith.mulf %3, %3 : vector<8x128xf32>
    %cst_8 = arith.constant dense<0.000000e+00> : vector<128xf32>
    %11 = vector.multi_reduction <add>, %10, %cst_8 [0] : vector<8x128xf32> to vector<128xf32>
    %12 = vector.shape_cast %11 : vector<128xf32> to vector<1x128xf32>
    %13 = arith.addf %9, %12 : vector<1x128xf32>
    %c0_9 = arith.constant 0 : index
    %c0_10 = arith.constant 0 : index
    %14 = vector.load %arg3[%c0_9, %c0_10] : memref<1x128xf32, #tpu.memory_space<vmem>>, vector<1x128xf32>
    tpu.vector_store %arg3[%c0_9, %c0_10], %13 {strides = array<i32>} : memref<1x128xf32, #tpu.memory_space<vmem>>, vector<1x128xf32>,
    return
  }
  func.func @transform_0(%arg0: i32) -> (i32, i32) {
    %c0_i32 = arith.constant 0 : i32
    %c0_i32_0 = arith.constant 0 : i32
    return %arg0, %c0_i32 : i32, i32
  }
  func.func @transform_1(%arg0: i32) -> (i32, i32) {
    %c0_i32 = arith.constant 0 : i32
    %c0_i32_0 = arith.constant 0 : i32
    %c0_i32_1 = arith.constant 0 : i32
    return %c0_i32, %c0_i32_0 : i32, i32
  }
  func.func @transform_2(%arg0: i32) -> (i32, i32) {
    %c0_i32 = arith.constant 0 : i32
    %c0_i32_0 = arith.constant 0 : i32
    %c0_i32_1 = arith.constant 0 : i32
    return %c0_i32, %c0_i32_0 : i32, i32
  }
}

</mosaic_0001>

<bundles_post_ra>
// kernel: tpu_custom_call.1
= control target key start
LH: loop header
LB: loop body
LE: loop exit
PB: predicated region body
PF: predicated region fallthrough
CT: control target
= control target key end

     0   :  { %8 = vsyncpa [#allocation3], 0  ;;  %s218_s0 = inlined_call_operand.hbm [shape: f32[8,128], index: 0, kind: input, shape index: {}]   ;;  %s219_s1 = inlined_call_operand.hbm [shape: f32[1,128], index: 1, kind: output, shape index: {0}]   ;;  %s220_s2 = inlined_call_operand.hbm [shape: f32[1,128], index: 2, kind: output, shape index: {1}]  }
   0x1   :  { %9 = vsyncpa [#allocation4], 0 }
   0x2   :  { %10 = vsyncpa [#allocation7], 0  ;;  %s155_s9 = smov [#allocation2]   ;;  %s83_s13 = scalar_lea.hbm %s218_s0, 128 }
   0x3   :  { %s17_s10 = sshll.u32 %s155_s9, 4  ;;  %p84_p0 = scmp.ne.s32.totalorder %s218_s0, %s83_s13  ;;  %s18_s10 = int_to_ptr.vmem [resolvable:$true] %s17_s10 }
   0x4   :  { %p87_p1 = scmp.lt.u32.totalorder %s83_s13, %s218_s0 }
   0x6   :  { %p89_p2 = pnand %p87_p1, %p84_p0 }
   0x8   :  { %92 = shalt.err (!%p89_p2)
}
   0x9   :  { %s93_s18 = scalar_lea.vmem %s18_s10, 128  ;;  %p98_p4 = scmp.lt.s32.totalorder %s18_s10, %s18_s10 }
   0xa   :  { %p94_p3 = scmp.ne.s32.totalorder %s18_s10, %s93_s18  ;;  %p99_p5 = scmp.lt.s32.totalorder %s93_s18, %s93_s18 }
   0xc   :  { %p100_p6 = por %p99_p5, %p98_p4 }
   0xe   :  { %p101_p7 = pnand %p100_p6, %p94_p3 }
  0x10   :  { %104 = shalt.err (!%p101_p7)
}
  0x11   :  { %20 = dma.hbm_to_vmem [thread:$0]  %s218_s0, 128, %s18_s10, [#allocation3]  }
  0x12   :  { %149 = dma.done.wait [#allocation3], 128  }
  0x13   :  { %150 = vsyncadd [#allocation3], 4294967168  ;;  %v156_v0 = vmov 0.0   ;;  %v30_v1 = vld [vmem:[#allocation2] sm:$0xff]  ;;  %s157_s21 = smov [#allocation5]   ;;  %s158_s0 = smov [#allocation6]  }
  0x14   :  { %28 = vst [vmem:[#allocation5] sm:$0x1] %v156_v0  ;;  %29 = vst [vmem:[#allocation6] sm:$0x1] %v156_v0  ;;  %v32_v2 = vrot.slane %v30_v1, 4  ;;  %v41_v3 = vmul.f32 %v30_v1, %v30_v1  ;;  %s56_s22 = sshll.u32 %s157_s21, 4  ;;  %s57_s22 = int_to_ptr.vmem [resolvable:$true] %s56_s22 }
  0x15   :  { %s66_s23 = sshll.u32 %s158_s0, 4  ;;  %s105_s24 = scalar_lea.vmem %s57_s22, 16  ;;  %s186_s23 = int_to_ptr.vmem [resolvable:$true] %s66_s23 }
  0x16   :  { %v33_v4 = vadd.f32 %v32_v2, %v30_v1  ;;  %v42_v5 = vrot.slane %v41_v3, 4  ;;  %p106_p8 = scmp.ne.s32.totalorder %s57_s22, %s105_s24  ;;  %s109_s25 = scalar_lea.vmem %s57_s22, 32 }
  0x17   :  { %p110_p9 = scmp.lt.s32.totalorder %s57_s22, %s57_s22  ;;  %p111_p10 = scmp.lt.s32.totalorder %s109_s25, %s105_s24 }
  0x18   :  { %v34_v6 = vrot.slane %v33_v4, 2  ;;  %v43_v7 = vadd.f32 %v42_v5, %v41_v3 }
  0x19   :  { %p112_p11 = por %p111_p10, %p110_p9 }
  0x1a   :  { %v35_v8 = vadd.f32 %v34_v6, %v33_v4  ;;  %v44_v9 = vrot.slane %v43_v7, 2 }
  0x1b   :  { %v31_v12 = vld [vmem:[#allocation5] sm:$0x1]  ;;  %v40_v15 = vld [vmem:[#allocation6] sm:$0x1]  ;;  %p113_p12 = pnand %p112_p11, %p106_p8 }
  0x1c   :  { %v36_v10 = vrot.slane %v35_v8, 1  ;;  %v45_v11 = vadd.f32 %v44_v9, %v43_v7 }
  0x1e   :  { %v37_v13 = vadd.f32 %v36_v10, %v35_v8  ;;  %v46_v14 = vrot.slane %v45_v11, 1 }
  0x20   :  { %v38_v16 = vadd.f32 %v37_v13, %v31_v12  ;;  %v47_v17 = vadd.f32 %v46_v14, %v45_v11 }
  0x22   :  { %39 = vst [vmem:[#allocation5] sm:$0x1] %v38_v16  ;;  %v48_v18 = vadd.f32 %v47_v17, %v40_v15 }
  0x23   :  { %116 = shalt.err (!%p113_p12)
}
  0x24   :  { %s117_s28 = scalar_lea.hbm %s219_s1, 16 }
  0x25   :  { %p118_p13 = scmp.ne.s32.totalorder %s219_s1, %s117_s28  ;;  %p121_p0 = scmp.lt.u32.totalorder %s117_s28, %s219_s1 }
  0x27   :  { %p123_p1 = pnand %p121_p0, %p118_p13 }
  0x29   :  { %126 = shalt.err (!%p123_p1)
}
  0x2a   :  { %59 = dma.vmem_to_hbm [thread:$0]  %s57_s22, 16, %s219_s1, [#allocation4]   ;;  %49 = vst [vmem:[#allocation6] sm:$0x1] %v48_v18 }
  0x2b   :  { %s127_s7 = scalar_lea.vmem %s186_s23, 16  ;;  %s131_s8 = scalar_lea.vmem %s186_s23, 32 }
  0x2c   :  { %p128_p2 = scmp.ne.s32.totalorder %s186_s23, %s127_s7  ;;  %p132_p3 = scmp.lt.s32.totalorder %s186_s23, %s186_s23 }
  0x2d   :  { %p133_p4 = scmp.lt.s32.totalorder %s131_s8, %s127_s7 }
  0x2f   :  { %p134_p5 = por %p133_p4, %p132_p3 }
  0x31   :  { %p135_p6 = pnand %p134_p5, %p128_p2 }
  0x33   :  { %138 = shalt.err (!%p135_p6)
}
  0x34   :  { %s139_s11 = scalar_lea.hbm %s220_s2, 16 }
  0x35   :  { %p140_p7 = scmp.ne.s32.totalorder %s220_s2, %s139_s11  ;;  %p143_p8 = scmp.lt.u32.totalorder %s139_s11, %s220_s2 }
  0x37   :  { %p145_p9 = pnand %p143_p8, %p140_p7 }
  0x39   :  { %148 = shalt.err (!%p145_p9)
}
  0x3a   :  { %69 = dma.vmem_to_hbm [thread:$0]  %s186_s23, 16, %s220_s2, [#allocation7]  }
  0x3b   :  { %151 = dma.done.wait [#allocation4], 16  }
  0x3c   :  { %152 = vsyncadd [#allocation4], 4294967280 }
  0x3d   :  { %153 = dma.done.wait [#allocation7], 16  }
  0x3e   :  { %154 = vsyncadd [#allocation7], 4294967280 }
  0x3f   :  { %76 = vsyncpa [#allocation3], 1 }
  0x40   :  { %77 = vsyncpa [#allocation4], 1 }
  0x41   :  { %78 = vsyncpa [#allocation7], 1 }

</bundles_post_ra>
